<compile_context>
chip_gen: v7x
topology: tpu7x:2x2x1
jax: 0.10.0
libtpu: 0.0.40
codegen_flags: <defaults>
</compile_context>

<pallas_src>
import functools
import math

import jax
import jax.numpy as jnp
from jax.experimental import pallas as pl
from jax.experimental.pallas import tpu as pltpu


def _round_up(x, m):
    return (x + m - 1) // m * m


def _pick_tile(dim, unit, max_tile):
    """Return (tile, padded_dim).

    Either a single full-extent block (tile == dim, always legal), or a tile
    that is a multiple of `unit` and divides the (unit-aligned) padded dim.
    """
    if dim <= max_tile:
        return dim, dim
    dim_u = _round_up(dim, unit)
    t = (max_tile // unit) * unit
    while t >= unit:
        if dim_u % t == 0:
            return t, dim_u
        t -= unit
    return max_tile, _round_up(dim, max_tile)


# ---------------------------------------------------------------------------
# Tiled matmul + bias kernels (bf16 MXU inputs, f32 accumulation)
# ---------------------------------------------------------------------------

def _mm_bias_single_k_kernel(a_ref, b_ref, bias_ref, o_ref):
    # Whole K reduction in one tile: no scratch accumulator needed.
    a = a_ref[...].astype(jnp.bfloat16)
    b = b_ref[...].astype(jnp.bfloat16)
    acc = jnp.dot(a, b, preferred_element_type=jnp.float32)
    o_ref[...] = (acc + bias_ref[...]).astype(o_ref.dtype)


def _mm_bias_multi_k_kernel(a_ref, b_ref, bias_ref, o_ref, acc_ref):
    @pl.when(pl.program_id(2) == 0)
    def _init():
        acc_ref[...] = jnp.zeros_like(acc_ref)

    a = a_ref[...].astype(jnp.bfloat16)
    b = b_ref[...].astype(jnp.bfloat16)
    acc_ref[...] += jnp.dot(a, b, preferred_element_type=jnp.float32)

    @pl.when(pl.program_id(2) == pl.num_programs(2) - 1)
    def _finish():
        o_ref[...] = (acc_ref[...] + bias_ref[...]).astype(o_ref.dtype)


def matmul_bias(a, b, bias, *, out_dtype=jnp.float32,
                tm_max=256, tn_max=512, tk_max=512):
    """out = a @ b + bias ;  a:(M,K)  b:(K,N) (already (in,out) layout)  bias:(N,)."""
    M, K = a.shape
    Kb, N = b.shape
    assert K == Kb

    tm, Mp = _pick_tile(M, 8, tm_max)
    tn, Np = _pick_tile(N, 128, tn_max)
    tk, Kp = _pick_tile(K, 128, tk_max)

    if Mp != M or Kp != K:                  # no-op when already aligned
        a = jnp.pad(a, ((0, Mp - M), (0, Kp - K)))
    if Kp != K or Np != N:
        b = jnp.pad(b, ((0, Kp - K), (0, Np - N)))
    bias2 = bias.reshape(1, N).astype(jnp.float32)
    if Np != N:
        bias2 = jnp.pad(bias2, ((0, 0), (0, Np - N)))

    nk = Kp // tk
    if nk == 1:
        out = pl.pallas_call(
            _mm_bias_single_k_kernel,
            out_shape=jax.ShapeDtypeStruct((Mp, Np), out_dtype),
            grid=(Mp // tm, Np // tn),
            in_specs=[
                pl.BlockSpec((tm, tk), lambda i, j: (i, 0)),
                pl.BlockSpec((tk, tn), lambda i, j: (0, j)),
                pl.BlockSpec((1, tn), lambda i, j: (0, j)),
            ],
            out_specs=pl.BlockSpec((tm, tn), lambda i, j: (i, j)),
            compiler_params=pltpu.CompilerParams(
                dimension_semantics=("parallel", "parallel")),
        )(a, b, bias2)
    else:
        out = pl.pallas_call(
            _mm_bias_multi_k_kernel,
            out_shape=jax.ShapeDtypeStruct((Mp, Np), out_dtype),
            grid=(Mp // tm, Np // tn, nk),
            in_specs=[
                pl.BlockSpec((tm, tk), lambda i, j, k: (i, k)),
                pl.BlockSpec((tk, tn), lambda i, j, k: (k, j)),
                pl.BlockSpec((1, tn), lambda i, j, k: (0, j)),
            ],
            out_specs=pl.BlockSpec((tm, tn), lambda i, j, k: (i, j)),
            scratch_shapes=[pltpu.VMEM((tm, tn), jnp.float32)],
            compiler_params=pltpu.CompilerParams(
                dimension_semantics=("parallel", "parallel", "arbitrary")),
        )(a, b, bias2)

    if Mp != M or Np != N:
        out = out[:M, :N]
    return out


# ---------------------------------------------------------------------------
# Attention kernels: heads handled inside the kernel, lane-dense I/O blocks.
#   q:(B,Sq,D) bf16, kv:(B,Skv,2D) bf16 (K in first D lanes, V in last D).
#   The 1/sqrt(d_head) scale is already folded into the Q projection weights.
# ---------------------------------------------------------------------------

def _attn_single_kv_kernel(q_ref, kv_ref, o_ref, *, n_heads, kv_len):
    """Whole KV sequence resident in one block: single-pass softmax."""
    d = q_ref.shape[2]
    skv = kv_ref.shape[1]
    dh = d // n_heads
    need_mask = skv != kv_len            # static

    for h in range(n_heads):
        qh = q_ref[0, :, h * dh:(h + 1) * dh]                 # (tq, dh) bf16
        kh = kv_ref[0, :, h * dh:(h + 1) * dh]                # (skv, dh) bf16
        vh = kv_ref[0, :, d + h * dh:d + (h + 1) * dh]        # (skv, dh) bf16
        s = jax.lax.dot_general(qh, kh, (((1,), (1,)), ((), ())),
                                preferred_element_type=jnp.float32)
        if need_mask:
            col = jax.lax.broadcasted_iota(jnp.int32, s.shape, 1)
            s = jnp.where(col < kv_len, s, -1e30)
        m = jnp.max(s, axis=-1, keepdims=True)
        p = jnp.exp(s - m)
        l = jnp.sum(p, axis=-1, keepdims=True)
        oh = jnp.dot(p.astype(vh.dtype), vh,
                     preferred_element_type=jnp.float32)
        oh = oh * pl.reciprocal(l, approx=True)
        o_ref[0, :, h * dh:(h + 1) * dh] = oh.astype(o_ref.dtype)


def _attn_multi_kv_kernel(q_ref, kv_ref, o_ref, m_sc, l_sc, acc_sc, *,
                          n_heads, kv_len):
    """Fallback for long KV: online softmax over kv tiles (grid axis 2)."""
    ki = pl.program_id(2)
    nk = pl.num_programs(2)
    d = q_ref.shape[2]
    skv = kv_ref.shape[1]
    dh = d // n_heads
    need_mask = (kv_len % skv) != 0      # static: padding only if ragged

    @pl.when(ki == 0)
    def _init():
        m_sc[...] = jnp.full_like(m_sc, -1e30)
        l_sc[...] = jnp.zeros_like(l_sc)
        acc_sc[...] = jnp.zeros_like(acc_sc)

    for h in range(n_heads):
        qh = q_ref[0, :, h * dh:(h + 1) * dh]
        kh = kv_ref[0, :, h * dh:(h + 1) * dh]
        vh = kv_ref[0, :, d + h * dh:d + (h + 1) * dh]
        s = jax.lax.dot_general(qh, kh, (((1,), (1,)), ((), ())),
                                preferred_element_type=jnp.float32)
        if need_mask:
            col = ki * skv + jax.lax.broadcasted_iota(jnp.int32, s.shape, 1)
            s = jnp.where(col < kv_len, s, -1e30)
        m_prev = m_sc[h]
        m_new = jnp.maximum(m_prev, jnp.max(s, axis=-1, keepdims=True))
        alpha = jnp.exp(m_prev - m_new)
        p = jnp.exp(s - m_new)
        l_sc[h] = alpha * l_sc[h] + jnp.sum(p, axis=-1, keepdims=True)
        acc_sc[h] = alpha * acc_sc[h] + jnp.dot(
            p.astype(vh.dtype), vh, preferred_element_type=jnp.float32)
        m_sc[h] = m_new

    @pl.when(ki == nk - 1)
    def _finish():
        for h in range(n_heads):
            oh = acc_sc[h] * pl.reciprocal(l_sc[h], approx=True)
            o_ref[0, :, h * dh:(h + 1) * dh] = oh.astype(o_ref.dtype)


def fused_attention(q, kv, *, n_heads, tq_max=256, tkv=512,
                    kv_resident_max=1024):
    """softmax(q_h k_h^T) v_h for all heads; q:(B,Sq,D), kv:(B,Skv,2D) bf16."""
    B, Sq, D = q.shape
    _, Skv, D2 = kv.shape
    assert D2 == 2 * D and D % n_heads == 0
    dh = D // n_heads

    tq, Sqp = _pick_tile(Sq, 8, tq_max)
    if Sqp != Sq:
        q = jnp.pad(q, ((0, 0), (0, Sqp - Sq), (0, 0)))
    nq = Sqp // tq

    single = _round_up(Skv, 8) <= kv_resident_max
    if single:
        skv_blk = _round_up(Skv, 8)
        Skvp = skv_blk
    else:
        skv_blk, Skvp = _pick_tile(Skv, 8, tkv)
    if Skvp != Skv:
        kv = jnp.pad(kv, ((0, 0), (0, Skvp - Skv), (0, 0)))

    if single:
        kernel = functools.partial(_attn_single_kv_kernel,
                                   n_heads=n_heads, kv_len=Skv)
        grid = (B, nq)
        in_specs = [pl.BlockSpec((1, tq, D), lambda b, qi: (b, qi, 0)),
                    pl.BlockSpec((1, skv_blk, D2), lambda b, qi: (b, 0, 0))]
        out_spec = pl.BlockSpec((1, tq, D), lambda b, qi: (b, qi, 0))
        scratch = []
        sem = ("parallel", "parallel")
    else:
        kernel = functools.partial(_attn_multi_kv_kernel,
                                   n_heads=n_heads, kv_len=Skv)
        grid = (B, nq, Skvp // skv_blk)
        in_specs = [pl.BlockSpec((1, tq, D), lambda b, qi, ki: (b, qi, 0)),
                    pl.BlockSpec((1, skv_blk, D2), lambda b, qi, ki: (b, ki, 0))]
        out_spec = pl.BlockSpec((1, tq, D), lambda b, qi, ki: (b, qi, 0))
        scratch = [pltpu.VMEM((n_heads, tq, 1), jnp.float32),   # running max
                   pltpu.VMEM((n_heads, tq, 1), jnp.float32),   # running sum
                   pltpu.VMEM((n_heads, tq, dh), jnp.float32)]  # accumulator
        sem = ("parallel", "parallel", "arbitrary")

    out = pl.pallas_call(
        kernel,
        out_shape=jax.ShapeDtypeStruct((B, Sqp, D), jnp.bfloat16),
        grid=grid,
        in_specs=in_specs,
        out_specs=out_spec,
        scratch_shapes=scratch,
        compiler_params=pltpu.CompilerParams(dimension_semantics=sem),
    )(q, kv)
    if Sqp != Sq:
        out = out[:, :Sq, :]
    return out


# ---------------------------------------------------------------------------
# CrossAttention forward (matches the PyTorch module semantics)
# ---------------------------------------------------------------------------

def prepare_params(params, n_heads):
    """One-time (outside jit) weight prep: (out,in)->(in,out) transpose, bf16
    cast, fold 1/sqrt(d_head) into W_q/b_q, fuse W_k|W_v along the out dim."""
    d_embed = params["q"]["w"].shape[0]
    d_head = d_embed // n_heads
    scale = 1.0 / math.sqrt(d_head)
    wq = (params["q"]["w"].T * scale).astype(jnp.bfloat16)
    bq = (params["q"]["b"] * scale).astype(jnp.float32)
    wkv = jnp.concatenate([params["k"]["w"].T, params["v"]["w"].T],
                          axis=1).astype(jnp.bfloat16)
    bkv = jnp.concatenate([params["k"]["b"], params["v"]["b"]]
                          ).astype(jnp.float32)
    wo = params["out"]["w"].T.astype(jnp.bfloat16)
    bo = params["out"]["b"].astype(jnp.float32)
    return {"wq": wq, "bq": bq, "wkv": wkv, "bkv": bkv, "wo": wo, "bo": bo}


def cross_attention(prep, x, y, *, n_heads):
    B, Sq, D = x.shape
    _, Skv, Dc = y.shape

    # Projections: q from x; k and v fused into one matmul on y.
    q = matmul_bias(x.reshape(B * Sq, D), prep["wq"], prep["bq"],
                    out_dtype=jnp.bfloat16)
    kv = matmul_bias(y.reshape(B * Skv, Dc), prep["wkv"], prep["bkv"],
                     out_dtype=jnp.bfloat16)

    q = q.reshape(B, Sq, D)
    kv = kv.reshape(B, Skv, 2 * D)          # contiguous reshape, no transpose

    o = fused_attention(q, kv, n_heads=n_heads)          # (B, Sq, D) bf16

    out = matmul_bias(o.reshape(B * Sq, D), prep["wo"], prep["bo"],
                      out_dtype=jnp.float32)
    return out.reshape(B, Sq, D)


# ---------------------------------------------------------------------------
# Pure-JAX f32 references
# ---------------------------------------------------------------------------

def cross_attention_ref(params, x, y, *, n_heads):
    B, Sq, D = x.shape
    _, Skv, _ = y.shape
    dh = D // n_heads
    q = x @ params["q"]["w"].T + params["q"]["b"]
    k = y @ params["k"]["w"].T + params["k"]["b"]
    v = y @ params["v"]["w"].T + params["v"]["b"]
    q = q.reshape(B, Sq, n_heads, dh).transpose(0, 2, 1, 3)
    k = k.reshape(B, Skv, n_heads, dh).transpose(0, 2, 1, 3)
    v = v.reshape(B, Skv, n_heads, dh).transpose(0, 2, 1, 3)
    w = (q @ jnp.swapaxes(k, -1, -2)) / math.sqrt(dh)
    w = jax.nn.softmax(w, axis=-1)
    o = (w @ v).transpose(0, 2, 1, 3).reshape(B, Sq, D)
    return o @ params["out"]["w"].T + params["out"]["b"]


def attention_ref(q, kv, n_heads):
    """Reference for the standalone attention kernel (no scale, kv fused)."""
    B, Sq, D = q.shape
    Skv = kv.shape[1]
    dh = D // n_heads
    qf = q.astype(jnp.float32)
    kvf = kv.astype(jnp.float32)
    k, v = kvf[..., :D], kvf[..., D:]
    qh = qf.reshape(B, Sq, n_heads, dh).transpose(0, 2, 1, 3)
    kh = k.reshape(B, Skv, n_heads, dh).transpose(0, 2, 1, 3)
    vh = v.reshape(B, Skv, n_heads, dh).transpose(0, 2, 1, 3)
    w = jax.nn.softmax(qh @ jnp.swapaxes(kh, -1, -2), axis=-1)
    return (w @ vh).transpose(0, 2, 1, 3).reshape(B, Sq, D)


# ---------------------------------------------------------------------------
# Deterministic parameter construction
# ---------------------------------------------------------------------------

def _linear_params(key, d_in, d_out):
    k1, k2 = jax.random.split(key)
    w = jax.random.normal(k1, (d_out, d_in), jnp.float32) / math.sqrt(d_in)
    b = 0.01 * jax.random.normal(k2, (d_out,), jnp.float32)
    return {"w": w, "b": b}


def build_params(key, d_embed, d_cross):
    k1, k2, k3, k4 = jax.random.split(key, 4)
    return {"q": _linear_params(k1, d_embed, d_embed),
            "k": _linear_params(k2, d_cross, d_embed),
            "v": _linear_params(k3, d_cross, d_embed),
            "out": _linear_params(k4, d_embed, d_embed)}


# ---------------------------------------------------------------------------

if __name__ == "__main__":
    key = jax.random.PRNGKey(0)
    kx, ky, kp, kq2, kkv2 = jax.random.split(key, 5)

    # --- Test 1: full CrossAttention forward (single-resident-KV fast path) --
    B, Sq, Skv = 2, 8, 12
    d_embed, d_cross, n_heads = 32, 48, 4

    x = jax.random.normal(kx, (B, Sq, d_embed), jnp.float32)
    y = jax.random.normal(ky, (B, Skv, d_cross), jnp.float32)
    params = build_params(kp, d_embed, d_cross)
    prep = prepare_params(params, n_heads)     # one-time, outside jit

    fwd = jax.jit(functools.partial(cross_attention, n_heads=n_heads))
    out = jax.block_until_ready(fwd(prep, x, y))

    assert out.shape == (B, Sq, d_embed)
    assert bool(jnp.all(jnp.isfinite(out)))
    ref = cross_attention_ref(params, x, y, n_heads=n_heads)
    max_err = float(jnp.max(jnp.abs(out - ref)))
    assert max_err < 0.1, f"cross_attention max abs err {max_err}"

    # --- Test 2: online-softmax multi-KV-tile fallback path -----------------
    B2, Sq2, Skv2, D2, H2 = 2, 16, 20, 32, 4
    q2 = jax.random.normal(kq2, (B2, Sq2, D2), jnp.float32).astype(jnp.bfloat16)
    kv2 = jax.random.normal(kkv2, (B2, Skv2, 2 * D2), jnp.float32
                            ).astype(jnp.bfloat16)
    attn2 = jax.jit(functools.partial(fused_attention, n_heads=H2,
                                      tkv=8, kv_resident_max=8))
    o2 = jax.block_until_ready(attn2(q2, kv2))
    ref2 = attention_ref(q2, kv2, H2)
    max_err2 = float(jnp.max(jnp.abs(o2.astype(jnp.float32) - ref2)))
    assert max_err2 < 0.05, f"fused_attention (multi-kv) max abs err {max_err2}"

    print("KERNEL_OK")
</pallas_src>

<mosaic_0001>
module attributes {stable_mosaic.version = 11 : i64} {
  func.func @_mm_bias_single_k_kernel(%arg0: i32, %arg1: i32, %arg2: memref<24x48xf32, #tpu.memory_space<vmem>>, %arg3: memref<48x64xbf16, #tpu.memory_space<vmem>>, %arg4: memref<1x64xf32, #tpu.memory_space<vmem>>, %arg5: memref<24x64xbf16, #tpu.memory_space<vmem>>) attributes {dimension_semantics = [#tpu.dimension_semantics<parallel>, #tpu.dimension_semantics<parallel>], iteration_bounds = array<i64: 1, 1>, scalar_prefetch = 0 : i64, scratch_operands = 0 : i64, tpu.core_type = #tpu.core_type<tc>, window_params = [{transform_indices = @transform_0, window_bounds = array<i64: 24, 48>}, {transform_indices = @transform_1, window_bounds = array<i64: 48, 64>}, {transform_indices = @transform_2, window_bounds = array<i64: 1, 64>}, {transform_indices = @transform_3, window_bounds = array<i64: 24, 64>}]} {
    %c0 = arith.constant 0 : index
    %c0_0 = arith.constant 0 : index
    %0 = vector.load %arg2[%c0, %c0_0] : memref<24x48xf32, #tpu.memory_space<vmem>>, vector<24x48xf32>
    %1 = arith.truncf %0 : vector<24x48xf32> to vector<24x48xbf16>
    %c0_1 = arith.constant 0 : index
    %c0_2 = arith.constant 0 : index
    %2 = vector.load %arg3[%c0_1, %c0_2] : memref<48x64xbf16, #tpu.memory_space<vmem>>, vector<48x64xbf16>
    %cst = arith.constant dense<0.000000e+00> : vector<24x64xf32>
    %3 = tpu.matmul %1, %2, %cst {dimension_numbers = #tpu.dot_dimension_numbers<[1], [0], [0], [1], [0, 0, 1, 1], [], []>} : vector<24x48xbf16>, vector<48x64xbf16>, vector<24x64xf32> -> vector<24x64xf32>
    %c0_3 = arith.constant 0 : index
    %c0_4 = arith.constant 0 : index
    %4 = vector.load %arg4[%c0_3, %c0_4] : memref<1x64xf32, #tpu.memory_space<vmem>>, vector<1x64xf32>
    %5 = vector.broadcast %4 : vector<1x64xf32> to vector<24x64xf32>
    %6 = arith.addf %3, %5 : vector<24x64xf32>
    %7 = arith.truncf %6 : vector<24x64xf32> to vector<24x64xbf16>
    %c0_5 = arith.constant 0 : index
    %c0_6 = arith.constant 0 : index
    %8 = vector.load %arg5[%c0_5, %c0_6] : memref<24x64xbf16, #tpu.memory_space<vmem>>, vector<24x64xbf16>
    tpu.vector_store %arg5[%c0_5, %c0_6], %7 {strides = array<i32>} : memref<24x64xbf16, #tpu.memory_space<vmem>>, vector<24x64xbf16>,
    return
  }
  func.func @transform_0(%arg0: i32, %arg1: i32) -> (i32, i32) {
    %c0_i32 = arith.constant 0 : i32
    %c0_i32_0 = arith.constant 0 : i32
    return %arg0, %c0_i32 : i32, i32
  }
  func.func @transform_1(%arg0: i32, %arg1: i32) -> (i32, i32) {
    %c0_i32 = arith.constant 0 : i32
    %c0_i32_0 = arith.constant 0 : i32
    return %c0_i32, %arg1 : i32, i32
  }
  func.func @transform_2(%arg0: i32, %arg1: i32) -> (i32, i32) {
    %c0_i32 = arith.constant 0 : i32
    %c0_i32_0 = arith.constant 0 : i32
    return %c0_i32, %arg1 : i32, i32
  }
  func.func @transform_3(%arg0: i32, %arg1: i32) -> (i32, i32) {
    %c0_i32 = arith.constant 0 : i32
    return %arg0, %arg1 : i32, i32
  }
}

module attributes {stable_mosaic.version = 11 : i64} {
  func.func @_mm_bias_single_k_kernel(%arg0: i32, %arg1: i32, %arg2: memref<16x32xf32, #tpu.memory_space<vmem>>, %arg3: memref<32x32xbf16, #tpu.memory_space<vmem>>, %arg4: memref<1x32xf32, #tpu.memory_space<vmem>>, %arg5: memref<16x32xbf16, #tpu.memory_space<vmem>>) attributes {dimension_semantics = [#tpu.dimension_semantics<parallel>, #tpu.dimension_semantics<parallel>], iteration_bounds = array<i64: 1, 1>, scalar_prefetch = 0 : i64, scratch_operands = 0 : i64, tpu.core_type = #tpu.core_type<tc>, window_params = [{transform_indices = @transform_0, window_bounds = array<i64: 16, 32>}, {transform_indices = @transform_1, window_bounds = array<i64: 32, 32>}, {transform_indices = @transform_2, window_bounds = array<i64: 1, 32>}, {transform_indices = @transform_3, window_bounds = array<i64: 16, 32>}]} {
    %c0 = arith.constant 0 : index
    %c0_0 = arith.constant 0 : index
    %0 = vector.load %arg2[%c0, %c0_0] : memref<16x32xf32, #tpu.memory_space<vmem>>, vector<16x32xf32>
    %1 = arith.truncf %0 : vector<16x32xf32> to vector<16x32xbf16>
    %c0_1 = arith.constant 0 : index
    %c0_2 = arith.constant 0 : index
    %2 = vector.load %arg3[%c0_1, %c0_2] : memref<32x32xbf16, #tpu.memory_space<vmem>>, vector<32x32xbf16>
    %cst = arith.constant dense<0.000000e+00> : vector<16x32xf32>
    %3 = tpu.matmul %1, %2, %cst {dimension_numbers = #tpu.dot_dimension_numbers<[1], [0], [0], [1], [0, 0, 1, 1], [], []>} : vector<16x32xbf16>, vector<32x32xbf16>, vector<16x32xf32> -> vector<16x32xf32>
    %c0_3 = arith.constant 0 : index
    %c0_4 = arith.constant 0 : index
    %4 = vector.load %arg4[%c0_3, %c0_4] : memref<1x32xf32, #tpu.memory_space<vmem>>, vector<1x32xf32>
    %5 = vector.broadcast %4 : vector<1x32xf32> to vector<16x32xf32>
    %6 = arith.addf %3, %5 : vector<16x32xf32>
    %7 = arith.truncf %6 : vector<16x32xf32> to vector<16x32xbf16>
    %c0_5 = arith.constant 0 : index
    %c0_6 = arith.constant 0 : index
    %8 = vector.load %arg5[%c0_5, %c0_6] : memref<16x32xbf16, #tpu.memory_space<vmem>>, vector<16x32xbf16>
    tpu.vector_store %arg5[%c0_5, %c0_6], %7 {strides = array<i32>} : memref<16x32xbf16, #tpu.memory_space<vmem>>, vector<16x32xbf16>,
    return
  }
  func.func @transform_0(%arg0: i32, %arg1: i32) -> (i32, i32) {
    %c0_i32 = arith.constant 0 : i32
    %c0_i32_0 = arith.constant 0 : i32
    return %arg0, %c0_i32 : i32, i32
  }
  func.func @transform_1(%arg0: i32, %arg1: i32) -> (i32, i32) {
    %c0_i32 = arith.constant 0 : i32
    %c0_i32_0 = arith.constant 0 : i32
    return %c0_i32, %arg1 : i32, i32
  }
  func.func @transform_2(%arg0: i32, %arg1: i32) -> (i32, i32) {
    %c0_i32 = arith.constant 0 : i32
    %c0_i32_0 = arith.constant 0 : i32
    return %c0_i32, %arg1 : i32, i32
  }
  func.func @transform_3(%arg0: i32, %arg1: i32) -> (i32, i32) {
    %c0_i32 = arith.constant 0 : i32
    return %arg0, %arg1 : i32, i32
  }
}

module attributes {stable_mosaic.version = 11 : i64} {
  func.func @_attn_single_kv_kernel(%arg0: i32, %arg1: i32, %arg2: memref<1x8x32xbf16, #tpu.memory_space<vmem>>, %arg3: memref<1x16x64xbf16, #tpu.memory_space<vmem>>, %arg4: memref<1x8x32xbf16, #tpu.memory_space<vmem>>) attributes {dimension_semantics = [#tpu.dimension_semantics<parallel>, #tpu.dimension_semantics<parallel>], iteration_bounds = array<i64: 2, 1>, scalar_prefetch = 0 : i64, scratch_operands = 0 : i64, tpu.core_type = #tpu.core_type<tc>, window_params = [{transform_indices = @transform_0, window_bounds = array<i64: 1, 8, 32>}, {transform_indices = @transform_1, window_bounds = array<i64: 1, 16, 64>}, {transform_indices = @transform_2, window_bounds = array<i64: 1, 8, 32>}]} {
    %c0 = arith.constant 0 : index
    %c0_0 = arith.constant 0 : index
    %c0_1 = arith.constant 0 : index
    %0 = vector.load %arg2[%c0, %c0_0, %c0_1] : memref<1x8x32xbf16, #tpu.memory_space<vmem>>, vector<1x8x8xbf16>
    %1 = vector.shape_cast %0 : vector<1x8x8xbf16> to vector<8x8xbf16>
    %c0_2 = arith.constant 0 : index
    %c0_3 = arith.constant 0 : index
    %c0_4 = arith.constant 0 : index
    %2 = vector.load %arg3[%c0_2, %c0_3, %c0_4] : memref<1x16x64xbf16, #tpu.memory_space<vmem>>, vector<1x16x8xbf16>
    %3 = vector.shape_cast %2 : vector<1x16x8xbf16> to vector<16x8xbf16>
    %c0_5 = arith.constant 0 : index
    %c0_6 = arith.constant 0 : index
    %c32 = arith.constant 32 : index
    %4 = vector.load %arg3[%c0_5, %c0_6, %c32] : memref<1x16x64xbf16, #tpu.memory_space<vmem>>, vector<1x16x8xbf16>
    %5 = vector.shape_cast %4 : vector<1x16x8xbf16> to vector<16x8xbf16>
    %cst = arith.constant dense<0.000000e+00> : vector<8x16xf32>
    %6 = tpu.matmul %1, %3, %cst {dimension_numbers = #tpu.dot_dimension_numbers<[1], [1], [0], [0], [0, 0, 1, 0], [], []>} : vector<8x8xbf16>, vector<16x8xbf16>, vector<8x16xf32> -> vector<8x16xf32>
    %7 = tpu.iota {dimensions = array<i32: 1>} : vector<8x16xi32>
    %c12_i32 = arith.constant 12 : i32
    %8 = vector.broadcast %c12_i32 : i32 to vector<8x16xi32>
    %9 = arith.cmpi slt, %7, %8 : vector<8x16xi32>
    %cst_7 = arith.constant -1.000000e+30 : f32
    %10 = vector.broadcast %cst_7 : f32 to vector<8x16xf32>
    %11 = arith.select %9, %6, %10 : vector<8x16xi1>, vector<8x16xf32>
    %cst_8 = arith.constant dense<0xFF800000> : vector<8xf32>
    %12 = vector.multi_reduction <maximumf>, %11, %cst_8 [1] : vector<8x16xf32> to vector<8xf32>
    %13 = vector.shape_cast %12 : vector<8xf32> to vector<8x1xf32>
    %14 = vector.broadcast %13 : vector<8x1xf32> to vector<8x16xf32>
    %15 = arith.subf %11, %14 : vector<8x16xf32>
    %16 = math.exp %15 : vector<8x16xf32>
    %cst_9 = arith.constant dense<0.000000e+00> : vector<8xf32>
    %17 = vector.multi_reduction <add>, %16, %cst_9 [1] : vector<8x16xf32> to vector<8xf32>
    %18 = vector.shape_cast %17 : vector<8xf32> to vector<8x1xf32>
    %19 = arith.truncf %16 : vector<8x16xf32> to vector<8x16xbf16>
    %cst_10 = arith.constant dense<0.000000e+00> : vector<8x8xf32>
    %20 = tpu.matmul %19, %5, %cst_10 {dimension_numbers = #tpu.dot_dimension_numbers<[1], [0], [0], [1], [0, 0, 1, 1], [], []>} : vector<8x16xbf16>, vector<16x8xbf16>, vector<8x8xf32> -> vector<8x8xf32>
    %21 = tpu.reciprocal %18 {approx = true} : vector<8x1xf32> -> vector<8x1xf32>
    %22 = vector.broadcast %21 : vector<8x1xf32> to vector<8x8xf32>
    %23 = arith.mulf %20, %22 : vector<8x8xf32>
    %24 = arith.truncf %23 : vector<8x8xf32> to vector<8x8xbf16>
    %c0_11 = arith.constant 0 : index
    %c0_12 = arith.constant 0 : index
    %c0_13 = arith.constant 0 : index
    %25 = vector.load %arg4[%c0_11, %c0_12, %c0_13] : memref<1x8x32xbf16, #tpu.memory_space<vmem>>, vector<1x8x8xbf16>
    %26 = vector.shape_cast %25 : vector<1x8x8xbf16> to vector<8x8xbf16>
    %27 = vector.shape_cast %24 : vector<8x8xbf16> to vector<1x8x8xbf16>
    tpu.vector_store %arg4[%c0_11, %c0_12, %c0_13], %27 {strides = array<i32>} : memref<1x8x32xbf16, #tpu.memory_space<vmem>>, vector<1x8x8xbf16>,
    %c0_14 = arith.constant 0 : index
    %c0_15 = arith.constant 0 : index
    %c8 = arith.constant 8 : index
    %28 = vector.load %arg2[%c0_14, %c0_15, %c8] : memref<1x8x32xbf16, #tpu.memory_space<vmem>>, vector<1x8x8xbf16>
    %29 = vector.shape_cast %28 : vector<1x8x8xbf16> to vector<8x8xbf16>
    %c0_16 = arith.constant 0 : index
    %c0_17 = arith.constant 0 : index
    %c8_18 = arith.constant 8 : index
    %30 = vector.load %arg3[%c0_16, %c0_17, %c8_18] : memref<1x16x64xbf16, #tpu.memory_space<vmem>>, vector<1x16x8xbf16>
    %31 = vector.shape_cast %30 : vector<1x16x8xbf16> to vector<16x8xbf16>
    %c0_19 = arith.constant 0 : index
    %c0_20 = arith.constant 0 : index
    %c40 = arith.constant 40 : index
    %32 = vector.load %arg3[%c0_19, %c0_20, %c40] : memref<1x16x64xbf16, #tpu.memory_space<vmem>>, vector<1x16x8xbf16>
    %33 = vector.shape_cast %32 : vector<1x16x8xbf16> to vector<16x8xbf16>
    %cst_21 = arith.constant dense<0.000000e+00> : vector<8x16xf32>
    %34 = tpu.matmul %29, %31, %cst_21 {dimension_numbers = #tpu.dot_dimension_numbers<[1], [1], [0], [0], [0, 0, 1, 0], [], []>} : vector<8x8xbf16>, vector<16x8xbf16>, vector<8x16xf32> -> vector<8x16xf32>
    %35 = tpu.iota {dimensions = array<i32: 1>} : vector<8x16xi32>
    %c12_i32_22 = arith.constant 12 : i32
    %36 = vector.broadcast %c12_i32_22 : i32 to vector<8x16xi32>
    %37 = arith.cmpi slt, %35, %36 : vector<8x16xi32>
    %cst_23 = arith.constant -1.000000e+30 : f32
    %38 = vector.broadcast %cst_23 : f32 to vector<8x16xf32>
    %39 = arith.select %37, %34, %38 : vector<8x16xi1>, vector<8x16xf32>
    %cst_24 = arith.constant dense<0xFF800000> : vector<8xf32>
    %40 = vector.multi_reduction <maximumf>, %39, %cst_24 [1] : vector<8x16xf32> to vector<8xf32>
    %41 = vector.shape_cast %40 : vector<8xf32> to vector<8x1xf32>
    %42 = vector.broadcast %41 : vector<8x1xf32> to vector<8x16xf32>
    %43 = arith.subf %39, %42 : vector<8x16xf32>
    %44 = math.exp %43 : vector<8x16xf32>
    %cst_25 = arith.constant dense<0.000000e+00> : vector<8xf32>
    %45 = vector.multi_reduction <add>, %44, %cst_25 [1] : vector<8x16xf32> to vector<8xf32>
    %46 = vector.shape_cast %45 : vector<8xf32> to vector<8x1xf32>
    %47 = arith.truncf %44 : vector<8x16xf32> to vector<8x16xbf16>
    %cst_26 = arith.constant dense<0.000000e+00> : vector<8x8xf32>
    %48 = tpu.matmul %47, %33, %cst_26 {dimension_numbers = #tpu.dot_dimension_numbers<[1], [0], [0], [1], [0, 0, 1, 1], [], []>} : vector<8x16xbf16>, vector<16x8xbf16>, vector<8x8xf32> -> vector<8x8xf32>
    %49 = tpu.reciprocal %46 {approx = true} : vector<8x1xf32> -> vector<8x1xf32>
    %50 = vector.broadcast %49 : vector<8x1xf32> to vector<8x8xf32>
    %51 = arith.mulf %48, %50 : vector<8x8xf32>
    %52 = arith.truncf %51 : vector<8x8xf32> to vector<8x8xbf16>
    %c0_27 = arith.constant 0 : index
    %c0_28 = arith.constant 0 : index
    %c8_29 = arith.constant 8 : index
    %53 = vector.load %arg4[%c0_27, %c0_28, %c8_29] : memref<1x8x32xbf16, #tpu.memory_space<vmem>>, vector<1x8x8xbf16>
    %54 = vector.shape_cast %53 : vector<1x8x8xbf16> to vector<8x8xbf16>
    %55 = vector.shape_cast %52 : vector<8x8xbf16> to vector<1x8x8xbf16>
    tpu.vector_store %arg4[%c0_27, %c0_28, %c8_29], %55 {strides = array<i32>} : memref<1x8x32xbf16, #tpu.memory_space<vmem>>, vector<1x8x8xbf16>,
    %c0_30 = arith.constant 0 : index
    %c0_31 = arith.constant 0 : index
    %c16 = arith.constant 16 : index
    %56 = vector.load %arg2[%c0_30, %c0_31, %c16] : memref<1x8x32xbf16, #tpu.memory_space<vmem>>, vector<1x8x8xbf16>
    %57 = vector.shape_cast %56 : vector<1x8x8xbf16> to vector<8x8xbf16>
    %c0_32 = arith.constant 0 : index
    %c0_33 = arith.constant 0 : index
    %c16_34 = arith.constant 16 : index
    %58 = vector.load %arg3[%c0_32, %c0_33, %c16_34] : memref<1x16x64xbf16, #tpu.memory_space<vmem>>, vector<1x16x8xbf16>
    %59 = vector.shape_cast %58 : vector<1x16x8xbf16> to vector<16x8xbf16>
    %c0_35 = arith.constant 0 : index
    %c0_36 = arith.constant 0 : index
    %c48 = arith.constant 48 : index
    %60 = vector.load %arg3[%c0_35, %c0_36, %c48] : memref<1x16x64xbf16, #tpu.memory_space<vmem>>, vector<1x16x8xbf16>
    %61 = vector.shape_cast %60 : vector<1x16x8xbf16> to vector<16x8xbf16>
    %cst_37 = arith.constant dense<0.000000e+00> : vector<8x16xf32>
    %62 = tpu.matmul %57, %59, %cst_37 {dimension_numbers = #tpu.dot_dimension_numbers<[1], [1], [0], [0], [0, 0, 1, 0], [], []>} : vector<8x8xbf16>, vector<16x8xbf16>, vector<8x16xf32> -> vector<8x16xf32>
    %63 = tpu.iota {dimensions = array<i32: 1>} : vector<8x16xi32>
    %c12_i32_38 = arith.constant 12 : i32
    %64 = vector.broadcast %c12_i32_38 : i32 to vector<8x16xi32>
    %65 = arith.cmpi slt, %63, %64 : vector<8x16xi32>
    %cst_39 = arith.constant -1.000000e+30 : f32
    %66 = vector.broadcast %cst_39 : f32 to vector<8x16xf32>
    %67 = arith.select %65, %62, %66 : vector<8x16xi1>, vector<8x16xf32>
    %cst_40 = arith.constant dense<0xFF800000> : vector<8xf32>
    %68 = vector.multi_reduction <maximumf>, %67, %cst_40 [1] : vector<8x16xf32> to vector<8xf32>
    %69 = vector.shape_cast %68 : vector<8xf32> to vector<8x1xf32>
    %70 = vector.broadcast %69 : vector<8x1xf32> to vector<8x16xf32>
    %71 = arith.subf %67, %70 : vector<8x16xf32>
    %72 = math.exp %71 : vector<8x16xf32>
    %cst_41 = arith.constant dense<0.000000e+00> : vector<8xf32>
    %73 = vector.multi_reduction <add>, %72, %cst_41 [1] : vector<8x16xf32> to vector<8xf32>
    %74 = vector.shape_cast %73 : vector<8xf32> to vector<8x1xf32>
    %75 = arith.truncf %72 : vector<8x16xf32> to vector<8x16xbf16>
    %cst_42 = arith.constant dense<0.000000e+00> : vector<8x8xf32>
    %76 = tpu.matmul %75, %61, %cst_42 {dimension_numbers = #tpu.dot_dimension_numbers<[1], [0], [0], [1], [0, 0, 1, 1], [], []>} : vector<8x16xbf16>, vector<16x8xbf16>, vector<8x8xf32> -> vector<8x8xf32>
    %77 = tpu.reciprocal %74 {approx = true} : vector<8x1xf32> -> vector<8x1xf32>
    %78 = vector.broadcast %77 : vector<8x1xf32> to vector<8x8xf32>
    %79 = arith.mulf %76, %78 : vector<8x8xf32>
    %80 = arith.truncf %79 : vector<8x8xf32> to vector<8x8xbf16>
    %c0_43 = arith.constant 0 : index
    %c0_44 = arith.constant 0 : index
    %c16_45 = arith.constant 16 : index
    %81 = vector.load %arg4[%c0_43, %c0_44, %c16_45] : memref<1x8x32xbf16, #tpu.memory_space<vmem>>, vector<1x8x8xbf16>
    %82 = vector.shape_cast %81 : vector<1x8x8xbf16> to vector<8x8xbf16>
    %83 = vector.shape_cast %80 : vector<8x8xbf16> to vector<1x8x8xbf16>
    tpu.vector_store %arg4[%c0_43, %c0_44, %c16_45], %83 {strides = array<i32>} : memref<1x8x32xbf16, #tpu.memory_space<vmem>>, vector<1x8x8xbf16>,
    %c0_46 = arith.constant 0 : index
    %c0_47 = arith.constant 0 : index
    %c24 = arith.constant 24 : index
    %84 = vector.load %arg2[%c0_46, %c0_47, %c24] : memref<1x8x32xbf16, #tpu.memory_space<vmem>>, vector<1x8x8xbf16>
    %85 = vector.shape_cast %84 : vector<1x8x8xbf16> to vector<8x8xbf16>
    %c0_48 = arith.constant 0 : index
    %c0_49 = arith.constant 0 : index
    %c24_50 = arith.constant 24 : index
    %86 = vector.load %arg3[%c0_48, %c0_49, %c24_50] : memref<1x16x64xbf16, #tpu.memory_space<vmem>>, vector<1x16x8xbf16>
    %87 = vector.shape_cast %86 : vector<1x16x8xbf16> to vector<16x8xbf16>
    %c0_51 = arith.constant 0 : index
    %c0_52 = arith.constant 0 : index
    %c56 = arith.constant 56 : index
    %88 = vector.load %arg3[%c0_51, %c0_52, %c56] : memref<1x16x64xbf16, #tpu.memory_space<vmem>>, vector<1x16x8xbf16>
    %89 = vector.shape_cast %88 : vector<1x16x8xbf16> to vector<16x8xbf16>
    %cst_53 = arith.constant dense<0.000000e+00> : vector<8x16xf32>
    %90 = tpu.matmul %85, %87, %cst_53 {dimension_numbers = #tpu.dot_dimension_numbers<[1], [1], [0], [0], [0, 0, 1, 0], [], []>} : vector<8x8xbf16>, vector<16x8xbf16>, vector<8x16xf32> -> vector<8x16xf32>
    %91 = tpu.iota {dimensions = array<i32: 1>} : vector<8x16xi32>
    %c12_i32_54 = arith.constant 12 : i32
    %92 = vector.broadcast %c12_i32_54 : i32 to vector<8x16xi32>
    %93 = arith.cmpi slt, %91, %92 : vector<8x16xi32>
    %cst_55 = arith.constant -1.000000e+30 : f32
    %94 = vector.broadcast %cst_55 : f32 to vector<8x16xf32>
    %95 = arith.select %93, %90, %94 : vector<8x16xi1>, vector<8x16xf32>
    %cst_56 = arith.constant dense<0xFF800000> : vector<8xf32>
    %96 = vector.multi_reduction <maximumf>, %95, %cst_56 [1] : vector<8x16xf32> to vector<8xf32>
    %97 = vector.shape_cast %96 : vector<8xf32> to vector<8x1xf32>
    %98 = vector.broadcast %97 : vector<8x1xf32> to vector<8x16xf32>
    %99 = arith.subf %95, %98 : vector<8x16xf32>
    %100 = math.exp %99 : vector<8x16xf32>
    %cst_57 = arith.constant dense<0.000000e+00> : vector<8xf32>
    %101 = vector.multi_reduction <add>, %100, %cst_57 [1] : vector<8x16xf32> to vector<8xf32>
    %102 = vector.shape_cast %101 : vector<8xf32> to vector<8x1xf32>
    %103 = arith.truncf %100 : vector<8x16xf32> to vector<8x16xbf16>
    %cst_58 = arith.constant dense<0.000000e+00> : vector<8x8xf32>
    %104 = tpu.matmul %103, %89, %cst_58 {dimension_numbers = #tpu.dot_dimension_numbers<[1], [0], [0], [1], [0, 0, 1, 1], [], []>} : vector<8x16xbf16>, vector<16x8xbf16>, vector<8x8xf32> -> vector<8x8xf32>
    %105 = tpu.reciprocal %102 {approx = true} : vector<8x1xf32> -> vector<8x1xf32>
    %106 = vector.broadcast %105 : vector<8x1xf32> to vector<8x8xf32>
    %107 = arith.mulf %104, %106 : vector<8x8xf32>
    %108 = arith.truncf %107 : vector<8x8xf32> to vector<8x8xbf16>
    %c0_59 = arith.constant 0 : index
    %c0_60 = arith.constant 0 : index
    %c24_61 = arith.constant 24 : index
    %109 = vector.load %arg4[%c0_59, %c0_60, %c24_61] : memref<1x8x32xbf16, #tpu.memory_space<vmem>>, vector<1x8x8xbf16>
    %110 = vector.shape_cast %109 : vector<1x8x8xbf16> to vector<8x8xbf16>
    %111 = vector.shape_cast %108 : vector<8x8xbf16> to vector<1x8x8xbf16>
    tpu.vector_store %arg4[%c0_59, %c0_60, %c24_61], %111 {strides = array<i32>} : memref<1x8x32xbf16, #tpu.memory_space<vmem>>, vector<1x8x8xbf16>,
    return
  }
  func.func @transform_0(%arg0: i32, %arg1: i32) -> (i32, i32, i32) {
    %c0_i32 = arith.constant 0 : i32
    %c0_i32_0 = arith.constant 0 : i32
    return %arg0, %arg1, %c0_i32 : i32, i32, i32
  }
  func.func @transform_1(%arg0: i32, %arg1: i32) -> (i32, i32, i32) {
    %c0_i32 = arith.constant 0 : i32
    %c0_i32_0 = arith.constant 0 : i32
    %c0_i32_1 = arith.constant 0 : i32
    return %arg0, %c0_i32, %c0_i32_0 : i32, i32, i32
  }
  func.func @transform_2(%arg0: i32, %arg1: i32) -> (i32, i32, i32) {
    %c0_i32 = arith.constant 0 : i32
    %c0_i32_0 = arith.constant 0 : i32
    return %arg0, %arg1, %c0_i32 : i32, i32, i32
  }
}

module attributes {stable_mosaic.version = 11 : i64} {
  func.func @_mm_bias_single_k_kernel(%arg0: i32, %arg1: i32, %arg2: memref<16x32xbf16, #tpu.memory_space<vmem>>, %arg3: memref<32x32xbf16, #tpu.memory_space<vmem>>, %arg4: memref<1x32xf32, #tpu.memory_space<vmem>>, %arg5: memref<16x32xf32, #tpu.memory_space<vmem>>) attributes {dimension_semantics = [#tpu.dimension_semantics<parallel>, #tpu.dimension_semantics<parallel>], iteration_bounds = array<i64: 1, 1>, scalar_prefetch = 0 : i64, scratch_operands = 0 : i64, tpu.core_type = #tpu.core_type<tc>, window_params = [{transform_indices = @transform_0, window_bounds = array<i64: 16, 32>}, {transform_indices = @transform_1, window_bounds = array<i64: 32, 32>}, {transform_indices = @transform_2, window_bounds = array<i64: 1, 32>}, {transform_indices = @transform_3, window_bounds = array<i64: 16, 32>}]} {
    %c0 = arith.constant 0 : index
    %c0_0 = arith.constant 0 : index
    %0 = vector.load %arg2[%c0, %c0_0] : memref<16x32xbf16, #tpu.memory_space<vmem>>, vector<16x32xbf16>
    %c0_1 = arith.constant 0 : index
    %c0_2 = arith.constant 0 : index
    %1 = vector.load %arg3[%c0_1, %c0_2] : memref<32x32xbf16, #tpu.memory_space<vmem>>, vector<32x32xbf16>
    %cst = arith.constant dense<0.000000e+00> : vector<16x32xf32>
    %2 = tpu.matmul %0, %1, %cst {dimension_numbers = #tpu.dot_dimension_numbers<[1], [0], [0], [1], [0, 0, 1, 1], [], []>} : vector<16x32xbf16>, vector<32x32xbf16>, vector<16x32xf32> -> vector<16x32xf32>
    %c0_3 = arith.constant 0 : index
    %c0_4 = arith.constant 0 : index
    %3 = vector.load %arg4[%c0_3, %c0_4] : memref<1x32xf32, #tpu.memory_space<vmem>>, vector<1x32xf32>
    %4 = vector.broadcast %3 : vector<1x32xf32> to vector<16x32xf32>
    %5 = arith.addf %2, %4 : vector<16x32xf32>
    %c0_5 = arith.constant 0 : index
    %c0_6 = arith.constant 0 : index
    %6 = vector.load %arg5[%c0_5, %c0_6] : memref<16x32xf32, #tpu.memory_space<vmem>>, vector<16x32xf32>
    tpu.vector_store %arg5[%c0_5, %c0_6], %5 {strides = array<i32>} : memref<16x32xf32, #tpu.memory_space<vmem>>, vector<16x32xf32>,
    return
  }
  func.func @transform_0(%arg0: i32, %arg1: i32) -> (i32, i32) {
    %c0_i32 = arith.constant 0 : i32
    %c0_i32_0 = arith.constant 0 : i32
    return %arg0, %c0_i32 : i32, i32
  }
  func.func @transform_1(%arg0: i32, %arg1: i32) -> (i32, i32) {
    %c0_i32 = arith.constant 0 : i32
    %c0_i32_0 = arith.constant 0 : i32
    return %c0_i32, %arg1 : i32, i32
  }
  func.func @transform_2(%arg0: i32, %arg1: i32) -> (i32, i32) {
    %c0_i32 = arith.constant 0 : i32
    %c0_i32_0 = arith.constant 0 : i32
    return %c0_i32, %arg1 : i32, i32
  }
  func.func @transform_3(%arg0: i32, %arg1: i32) -> (i32, i32) {
    %c0_i32 = arith.constant 0 : i32
    return %arg0, %arg1 : i32, i32
  }
}

</mosaic_0001>

<bundles_post_ra>
// kernel: cross_attention.4
= control target key start
LH: loop header
LB: loop body
LE: loop exit
PB: predicated region body
PF: predicated region fallthrough
CT: control target
= control target key end

     0   :  { %v124_v0 = vmov 0.0   ;;  %vm125_vm0 = vmmov 0   ;;  %vm41_vm1 = vcmask 261120   ;;  %vm94_vm2 = vcmask 257024   ;;  %s167_s1 = inlined_call_operand.vmem [shape: bf16[32,32], index: 1, kind: input, shape index: {}]   ;;  %s168_s0 = inlined_call_operand.vmem [shape: f32[16,32], index: 0, kind: input, shape index: {}]   ;;  %s169_s2 = inlined_call_operand.vmem [shape: f32[1,32], index: 2, kind: input, shape index: {}]   ;;  %s170_s3 = inlined_call_operand.vmem [shape: bf16[16,32], index: 3, kind: output, shape index: {}]  }
   0x1   :  { %112 = vmatprep.subr.bf16.mxu0 %v124_v0  ;;  %v122_v1 = vld [vmem:[%s167_s1] sm:$0xff]   ;;  %116 = vmatprep.mubr.msk.bf16.mxu0 %vm125_vm0, %v124_v0  ;;  %v123_v2 = vld [vmem:[%s167_s1 + $0x8] sm:$0xff]  }
   0x2   :  { %113 = vmatpush3.bf16.msra.mxu0 %v122_v1  ;;  %v15_v3 = vld [vmem:[%s168_s0] sm:$0xff]  ;;  %v16_v4 = vld [vmem:[%s168_s0 + $0x8] sm:$0xff] }
   0x3   :  { %114 = vmatprep.subr.bf16.mxu0 %v124_v0  ;;  %v17_v5 = vpack.c.bf16 %v16_v4, %v15_v3  ;;  %v101_v6 = vld [vmem:[%s169_s2] ss:$0 sm:$0xff] }
   0x6   :  { %115 = vmatpush3.bf16.msra.mxu0 %v123_v2 }
   0x9   :  { %117 = vmatmul.mubr.msk.bf16.vlgmr.msra.gmra.mrb[0].mxu0 %vm41_vm1, %v17_v5 }
  0xdc   :  { %v79_v7 = vpop.f32.mrb[0].mxu0 }
  0xdd   :  { %v80_v8 = vadd.f32 %v101_v6, %v79_v7  ;;  %v118_v9 = vpop.f32.mrb[1].mxu0 }
  0xde   :  { %v82_v10 = vpop.f32.mrb[2].mxu0 }
  0xdf   :  { %v107_v11 = vpack.c.bf16 %v80_v8, %v80_v8  ;;  %v83_v12 = vadd.f32 %v101_v6, %v82_v10  ;;  %v119_v13 = vpop.f32.mrb[3].mxu0 }
  0xe1   :  { %95 = vst.msk [vmem:[%s170_s3] sm:$0xf] %vm94_vm2, %v107_v11  ;;  %v108_v14 = vpack.c.bf16 %v83_v12, %v83_v12 }
  0xe3   :  { %96 = vst.msk [vmem:[%s170_s3 + $0x4] sm:$0xf] %vm94_vm2, %v108_v14 }

// kernel: cross_attention.5
= control target key start
LH: loop header
LB: loop body
LE: loop exit
PB: predicated region body
PF: predicated region fallthrough
CT: control target
= control target key end

     0   :  { %vm51_vm0 = vcmask 392192   ;;  %vm119_vm1 = vcmask 519168   ;;  %s207_s1 = inlined_call_operand.vmem [shape: bf16[48,64], index: 1, kind: input, shape index: {}]   ;;  %s208_s0 = inlined_call_operand.vmem [shape: f32[24,48], index: 0, kind: input, shape index: {}]   ;;  %s209_s2 = inlined_call_operand.vmem [shape: f32[1,64], index: 2, kind: input, shape index: {}]   ;;  %s210_s3 = inlined_call_operand.vmem [shape: bf16[24,64], index: 3, kind: output, shape index: {}]  }
   0x1   :  { %v154_v0 = vld [vmem:[%s207_s1] sm:$0xff]   ;;  %v155_v1 = vld [vmem:[%s207_s1 + $0x8] sm:$0xff]   ;;  %v156_v4 = vld [vmem:[%s207_s1 + $0x10] sm:$0xff]  }
   0x2   :  { %144 = vmatprep.subr.bf16.mxu0 %v154_v0  ;;  %v15_v2 = vld [vmem:[%s208_s0] sm:$0xff]  ;;  %v16_v3 = vld [vmem:[%s208_s0 + $0x8] sm:$0xff]  ;;  %v17_v6 = vld [vmem:[%s208_s0 + $0x10] sm:$0xff] }
   0x3   :  { %145 = vmatpush3.bf16.msra.mxu0 %v154_v0  ;;  %v18_v5 = vpack.c.bf16 %v16_v3, %v15_v2  ;;  %v19_v7 = vpack.c.bf16 %v17_v6, %v17_v6  ;;  %v127_v8 = vld [vmem:[%s209_s2] ss:$0 sm:$0xff] }
   0x4   :  { %146 = vmatprep.subr.bf16.mxu0 %v155_v1 }
   0x5   :  { %150 = vmatprep.mubr.msk.bf16.mxu0 %vm51_vm0, %v18_v5 }
   0x7   :  { %147 = vmatpush3.bf16.msra.mxu0 %v155_v1 }
   0x8   :  { %148 = vmatprep.subr.bf16.mxu0 %v156_v4 }
   0xb   :  { %149 = vmatpush3.bf16.msra.mxu0 %v156_v4 }
   0xe   :  { %151 = vmatmul.mubr.msk.bf16.vlgmr.msra.gmra.mrb[0].mxu0 %vm51_vm0, %v19_v7 }
  0xe1   :  { %v152_v9 = vpop.f32.mrb[0].mxu0 }
  0xe2   :  { %v101_v10 = vadd.f32 %v152_v9, %v127_v8  ;;  %v92_v11 = vpop.f32.mrb[1].mxu0 }
  0xe3   :  { %v93_v12 = vadd.f32 %v127_v8, %v92_v11  ;;  %v153_v13 = vpop.f32.mrb[2].mxu0 }
  0xe4   :  { %v138_v14 = vpack.c.bf16 %v101_v10, %v101_v10  ;;  %v95_v15 = vpop.f32.mrb[3].mxu0 }
  0xe5   :  { %v136_v16 = vpack.c.bf16 %v93_v12, %v93_v12  ;;  %v96_v17 = vadd.f32 %v127_v8, %v95_v15 }
  0xe6   :  { %122 = vst.msk [vmem:[%s210_s3 + $0x8] sm:$0xf] %vm119_vm1, %v138_v14 }
  0xe7   :  { %120 = vst.msk [vmem:[%s210_s3] sm:$0xf] %vm119_vm1, %v136_v16  ;;  %v137_v18 = vpack.c.bf16 %v96_v17, %v96_v17 }
  0xe9   :  { %121 = vst.msk [vmem:[%s210_s3 + $0x4] sm:$0xf] %vm119_vm1, %v137_v18 }

// kernel: cross_attention.7
= control target key start
LH: loop header
LB: loop body
LE: loop exit
PB: predicated region body
PF: predicated region fallthrough
CT: control target
= control target key end

     0   :  { %v157_v1 = vmov 0.0   ;;  %vm158_vm0 = vmmov 0   ;;  %s206_s0 = inlined_call_operand.vmem [shape: bf16[16,32], index: 0, kind: input, shape index: {}]   ;;  %s207_s1 = inlined_call_operand.vmem [shape: bf16[32,32], index: 1, kind: input, shape index: {}]   ;;  %s208_s2 = inlined_call_operand.vmem [shape: f32[1,32], index: 2, kind: input, shape index: {}]   ;;  %s209_s3 = inlined_call_operand.hbm [shape: f32[16,32], index: 3, kind: output, shape index: {}]  }
   0x1   :  { %v130_v0 = vld [vmem:[%s207_s1] sm:$0xff]   ;;  %117 = vmatprep.subr.bf16.mxu0 %v157_v1  ;;  %v131_v2 = vld [vmem:[%s207_s1 + $0x8] sm:$0xff]   ;;  %121 = vmatprep.mubr.msk.bf16.mxu0 %vm158_vm0, %v157_v1 }
   0x2   :  { %118 = vmatpush3.bf16.msra.mxu0 %v130_v0 }
   0x3   :  { %119 = vmatprep.subr.bf16.mxu0 %v157_v1 }
   0x4   :  { %8 = vsyncpa [#allocation3], 0  ;;  %v132_v3 = vld [vmem:[%s206_s0] sm:$0xff]   ;;  %vm46_vm1 = vcmask 261120   ;;  %s159_s20 = smov [#allocation2]  }
   0x5   :  { %v109_v4 = vld [vmem:[%s208_s2] ss:$0 sm:$0xff]  ;;  %s98_s21 = sshll.u32 %s159_s20, 4  ;;  %s99_s21 = int_to_ptr.vmem [resolvable:$true] %s98_s21 }
   0x6   :  { %120 = vmatpush3.bf16.msra.mxu0 %v131_v2  ;;  %s133_s1 = scalar_lea.vmem %s99_s21, 256  ;;  %p138_p1 = scmp.lt.s32.totalorder %s99_s21, %s99_s21 }
   0x7   :  { %p134_p0 = scmp.ne.s32.totalorder %s99_s21, %s133_s1  ;;  %p139_p2 = scmp.lt.s32.totalorder %s133_s1, %s133_s1 }
   0x9   :  { %122 = vmatmul.mubr.msk.bf16.vlgmr.msra.gmra.mrb[0].mxu0 %vm46_vm1, %v132_v3  ;;  %p140_p3 = por %p139_p2, %p138_p1 }
   0xb   :  { %p141_p4 = pnand %p140_p3, %p134_p0 }
  0xdc   :  { %v84_v5 = vpop.f32.mrb[0].mxu0 }
  0xdd   :  { %v85_v6 = vadd.f32 %v109_v4, %v84_v5  ;;  %v123_v7 = vpop.f32.mrb[1].mxu0 }
  0xde   :  { %v87_v8 = vpop.f32.mrb[2].mxu0 }
  0xdf   :  { %91 = vst.msk [vmem:[#allocation2] sm:$0xff] %vm46_vm1, %v85_v6  ;;  %v88_v9 = vadd.f32 %v109_v4, %v87_v8  ;;  %v124_v10 = vpop.f32.mrb[3].mxu0 }
  0xe1   :  { %92 = vst.msk [vmem:[#allocation2 + $0x8] sm:$0xff] %vm46_vm1, %v88_v9 }
  0xe2   :  { %144 = shalt.err (!%p141_p4)
}
  0xe3   :  { %s145_s22 = scalar_lea.hbm %s209_s3, 256 }
  0xe4   :  { %p146_p5 = scmp.ne.s32.totalorder %s209_s3, %s145_s22  ;;  %p149_p6 = scmp.lt.u32.totalorder %s145_s22, %s209_s3 }
  0xe6   :  { %p151_p7 = pnand %p149_p6, %p146_p5 }
  0xe8   :  { %154 = shalt.err (!%p151_p7)
}
  0xe9   :  { %s160_s27 = smov 128   ;;  %s161_s28 = smov 8  }
  0xea   :  { %104 = dma.vmem_to_hbm [thread:$0]  %s99_s21, 256, %s209_s3, [#allocation3], %s160_s27, %s160_s27, %s161_s28  }
  0xeb   :  { %155 = dma.done.wait [#allocation3], 256  }
  0xec   :  { %156 = vsyncadd [#allocation3], 4294967040 }
  0xed   :  { %108 = vsyncpa [#allocation3], 1 }

// kernel: cross_attention.6
= control target key start
LH: loop header
LB: loop body
LE: loop exit
PB: predicated region body
PF: predicated region fallthrough
CT: control target
= control target key end

     0   :  { %s992_s9 = smov 0   ;;  %s994_s10 = smov 0   ;;  %s1110_s0 = inlined_call_operand.vmem [shape: bf16[2,8,32], index: 0, kind: input, shape index: {}]   ;;  %s1111_s1 = inlined_call_operand.vmem [shape: bf16[2,16,64], index: 1, kind: input, shape index: {}]   ;;  %s1112_s2 = inlined_call_operand.vmem [shape: bf16[2,8,32], index: 2, kind: output, shape index: {}]  }
   0x1   :  { %s996_s11 = smov 0  }
   0x2 LB: > { %s24_s12 = sadd.s32 1, %s959_s10  ;;  %p789_p0 = scmp.ge.s32.totalorder %s963_s11, 1  ;;  %s963_s11 = sphi %s996_s11, %s12_s11   ;;  %s959_s10 = sphi %s994_s10, %s1114_s10   ;;  %s955_s9 = sphi %s992_s9, %s1113_s9  }
   0x3   : > { %p26_p1 = scmp.ge.s32.totalorder %s24_s12, 2  ;;  %p140_p2 = scmp.lt.s32.totalorder %s963_s11, 3 }
   0x5   : > { %s1116_s12 = smov (%p26_p1, %s24_s12), 0  ;;  %p141_p3 = pnand %p789_p0, %p140_p2 }
   0x6   : > { %p171_p4 = scmp.lt.s32.totalorder (!%p141_p3), %s955_s9, 1  ;;  %v965_v0 = vmov (!%p141_p3), 0.0   ;;  %vm966_vm0 = vmmov (!%p141_p3), 0   ;;  %vm199_vm1 = vcmask (!%p141_p3), 64512   ;;  %s967_s21 = smov (!%p141_p3), 120   ;;  %v246_v10 = vlaneseq (!%p141_p3) }
   0x7   : > { %144 = sbr.rel (%p141_p3) target bundleno = 1128 (0x468), region = 28  ;;  %834 = vmatprep.subr.bf16.mxu0 (!%p141_p3), %v965_v0  ;;  %836 = vmatprep.mubr.msk.bf16.mxu0 (!%p141_p3), %vm966_vm0, %v965_v0  ;;  %s968_s22 = smov (!%p141_p3), 112   ;;  %vm250_vm3 = vcmask (!%p141_p3), 130048   ;;  %vm310_vm4 = vcmask (!%p141_p3), 60416   ;;  %vm439_vm5 = vcmask (!%p141_p3), 126016   ;;  %vm568_vm6 = vcmask (!%p141_p3), 191616  }
   0x8   : > { %840 = vmatprep.subr.bf16.mxu1 (!%p141_p3), %v965_v0  ;;  %842 = vmatprep.mubr.msk.bf16.mxu1 (!%p141_p3), %vm966_vm0, %v965_v0  ;;  %s969_s23 = smov (!%p141_p3), 104   ;;  %v247_v11 = vand.u32 (!%p141_p3), 127, %v246_v10  ;;  %s970_s24 = smov (!%p141_p3), 96   ;;  %vm697_vm7 = vcmask (!%p141_p3), 257216  }
   0x9   : > { %s971_s25 = smov (!%p141_p3), 88   ;;  %s972_s26 = smov (!%p141_p3), 72  }
   0xa   : > { %vm248_vm2 = vcmp.lt.s32.totalorder (!%p141_p3), %v247_v11, 12  ;;  %s973_s27 = smov (!%p141_p3), 80   ;;  %s974_s3 = smov (!%p141_p3), 8  }
   0xb   : > { %s975_s4 = smov (!%p141_p3), 16   ;;  %s976_s5 = smov (!%p141_p3), 24  }
   0xe   : > { %s1118_s9 = smov (!%p171_p4, %s955_s9), 1 }
   0xf   : > { %s814_s13 = sshll.u32 %s1118_s9, 3  ;;  %s790_s14 = sshll.u32 %s1118_s9, 2 }
  0x10   : > { %s182_s17 = scalar_lea.vmem %s1111_s1, %s814_s13  ;;  %s177_s20 = scalar_lea.vmem %s1110_s0, %s790_s14 }
  0x11   : > { %v918_v1 = vld [vmem:[%s182_s17] sm:$0xff]   ;;  %s1095_s30 = scalar_lea.vmem %s1112_s2, %s790_s14 }
  0x12   : > { %v204_v2 = vsel %vm199_vm1, %v918_v1, 0  ;;  %v191_v3 = vld [vmem:[%s177_s20] sm:$0xf] }
  0x13   : > { %835 = vmatpush3.bf16.xpose.msra.mxu0 %v204_v2  ;;  %v1033_v4 = vld [vmem:[%s182_s17] sm:$0xff]  }
  0x14   : > { %852 = vmatprep.subr.bf16.mxu0 %v965_v0  ;;  %325 = vrot.lane.b32.xlu1 %v1033_v4, %s967_s21  ;;  %v920_v5 = vld [vmem:[%s177_s20] ss:$0 sps:$4 sm:$0xff]  }
  0x15   : > { %v1036_v6 = vld [vmem:[%s182_s17] sm:$0xff]  }
  0x16   : > { %v922_v7 = vld [vmem:[%s177_s20] ss:$0 sps:$4 sm:$0xff]  }
  0x17   : > { %v1039_v8 = vld [vmem:[%s182_s17] sm:$0xff]  }
  0x18   : > { %318 = vrot.lane.b32.xlu1 %v920_v5, %s967_s21  ;;  %v924_v9 = vld [vmem:[%s177_s20] ss:$0 sps:$4 sm:$0xff]  }
  0x1a   : > { %837 = vmatmul.mubr.msk.bf16.vlgmr.msra.gmra.mrb[0].mxu0 %vm199_vm1, %v191_v3 }
  0x1b   : > { %854 = vmatprep.mubr.msk.bf16.mxu0 %vm966_vm0, %v965_v0 }
  0x1c   : > { %454 = vrot.lane.b32.xlu1 %v1036_v6, %s968_s22 }
  0x20   : > { %447 = vrot.lane.b32.xlu1 %v922_v7, %s968_s22 }
  0x24   : > { %583 = vrot.lane.b32.xlu1 %v1039_v8, %s969_s23 }
  0x28   : > { %576 = vrot.lane.b32.xlu1 %v924_v9, %s969_s23 }
  0x86   : > { %v326_v22 = vpop.permute.xlu1 %325 }
  0x87   : > { %v331_v25 = vsel %vm199_vm1, %v326_v22, 0 }
  0x8a   : > { %v319_v23 = vpop.permute.xlu1 %318 }
  0x8e   : > { %v455_v27 = vpop.permute.xlu1 %454 }
  0x8f   : > { %v460_v29 = vsel %vm199_vm1, %v455_v27, 0 }
  0x92   : > { %v448_v28 = vpop.permute.xlu1 %447 }
  0x96   : > { %v584_v30 = vpop.permute.xlu1 %583 }
  0x97   : > { %v589_v31 = vsel %vm199_vm1, %v584_v30, 0 }
  0x9a   : > { %v577_v32 = vpop.permute.xlu1 %576 }
  0xed   : > { %v240_v12 = vpop.f32.mrb[0].mxu0 }
  0xee   : > { %v249_v13 = vsel %vm248_vm2, %v240_v12, -1e+30  ;;  %v838_v14 = vpop.f32.mrb[1].mxu0 }
  0xef   : > { %v243_v15 = vpop.f32.mrb[2].mxu0  ;;  %v251_v16 = vsel %vm250_vm3, %v249_v13, -inf }
  0xf0   : > { %252 = vmax.xlane.f32.xlu0 %v251_v16  ;;  %v839_v17 = vpop.f32.mrb[3].mxu0 }
 0x106   : > { %261 = vrot.lane.b32.xlu0 %v918_v1, %s970_s24 }
 0x17d   : > { %v253_v18 = vpop.xlane.xlu0 %252 }
 0x17e   : > { %v254_v19 = vsub.f32 %v249_v13, %v253_v18 }
 0x180   : > { %v255_v20 = vmul.f32 1.442695, %v254_v19 }
 0x181   : > { %v262_v21 = vpop.permute.xlu0 %261 }
 0x182   : > { %925 = vpow2.f32 %v255_v20  ;;  %841 = vmatpush3.bf16.msra.mxu1 %v262_v21 }
 0x183   : > { %846 = vmatprep.subr.bf16.mxu1 %v965_v0 }
 0x18c   : > { %v1045_v24 = vpop.eup %925 }
 0x18d   : > { %v260_v26 = vpack.c.bf16 %v1045_v24, %v1045_v24 }
 0x18f   : > { %843 = vmatmul.mubr.msk.bf16.vlgmr.msra.gmra.mrb[0].mxu1 %vm250_vm3, %v260_v26 }
 0x190   : > { %847 = vmatpush3.bf16.xpose.msra.mxu1 %v331_v25  ;;  %848 = vmatprep.mubr.msk.bf16.mxu1 %vm966_vm0, %v965_v0 }
 0x191   : > { %858 = vmatprep.subr.bf16.mxu1 %v965_v0 }
 0x197   : > { %849 = vmatmul.mubr.msk.bf16.vlgmr.msra.gmra.mrb[4].mxu1 %vm199_vm1, %v319_v23 }
 0x198   : > { %859 = vmatpush3.bf16.xpose.msra.mxu1 %v460_v29  ;;  %860 = vmatprep.mubr.msk.bf16.mxu1 %vm966_vm0, %v965_v0 }
 0x199   : > { %870 = vmatprep.subr.bf16.mxu1 %v965_v0 }
 0x19f   : > { %861 = vmatmul.mubr.msk.bf16.vlgmr.msra.gmra.mrb[8].mxu1 %vm199_vm1, %v448_v28 }
 0x1a0   : > { %871 = vmatpush3.bf16.xpose.msra.mxu1 %v589_v31  ;;  %872 = vmatprep.mubr.msk.bf16.mxu1 %vm966_vm0, %v965_v0 }
 0x1a7   : > { %873 = vmatmul.mubr.msk.bf16.vlgmr.msra.gmra.mrb[12].mxu1 %vm199_vm1, %v577_v32 }
 0x262   : > { %v1064_v33 = vpop.f32.mrb[0].mxu1 }
 0x263   : > { %v844_v34 = vpop.f32.mrb[1].mxu1 }
 0x264   : > { %v304_v35 = vpop.f32.mrb[2].mxu1 }
 0x265   : > { %v845_v36 = vpop.f32.mrb[3].mxu1 }
 0x26a   : > { %v367_v37 = vpop.f32.mrb[4].mxu1 }
 0x26b   : > { %v373_v38 = vsel %vm248_vm2, %v367_v37, -1e+30  ;;  %v850_v39 = vpop.f32.mrb[5].mxu1 }
 0x26c   : > { %v370_v40 = vpop.f32.mrb[6].mxu1  ;;  %v374_v41 = vsel %vm250_vm3, %v373_v38, -inf }
 0x26d   : > { %375 = vmax.xlane.f32.xlu1 %v374_v41  ;;  %v851_v42 = vpop.f32.mrb[7].mxu1 }
 0x272   : > { %v496_v43 = vpop.f32.mrb[8].mxu1 }
 0x273   : > { %v502_v44 = vsel %vm248_vm2, %v496_v43, -1e+30  ;;  %v862_v45 = vpop.f32.mrb[9].mxu1 }
 0x274   : > { %v499_v46 = vpop.f32.mrb[10].mxu1  ;;  %v503_v47 = vsel %vm250_vm3, %v502_v44, -inf }
 0x275   : > { %504 = vmax.xlane.f32.xlu0 %v503_v47  ;;  %v863_v48 = vpop.f32.mrb[11].mxu1 }
 0x27a   : > { %v625_v49 = vpop.f32.mrb[12].mxu1 }
 0x27b   : > { %v631_v50 = vsel %vm248_vm2, %v625_v49, -1e+30  ;;  %v874_v51 = vpop.f32.mrb[13].mxu1 }
 0x27c   : > { %v628_v52 = vpop.f32.mrb[14].mxu1  ;;  %v632_v53 = vsel %vm250_vm3, %v631_v50, -inf }
 0x27d   : > { %633 = vmax.xlane.f32.xlu0 %v632_v53  ;;  %v875_v54 = vpop.f32.mrb[15].mxu1 }
 0x27e   : > { %384 = vrot.lane.b32.xlu1 %v1033_v4, %s971_s25 }
 0x282   : > { %642 = vrot.lane.b32.xlu1 %v1039_v8, %s972_s26 }
 0x293   : > { %513 = vrot.lane.b32.xlu0 %v1036_v6, %s973_s27  ;;  %v257_v6 = vsel %vm250_vm3, %v1045_v24, 0.0 }
 0x2fa   : > { %v376_v55 = vpop.xlane.xlu1 %375 }
 0x2fb   : > { %v377_v56 = vsub.f32 %v373_v38, %v376_v55 }
 0x2fd   : > { %v378_v57 = vmul.f32 1.442695, %v377_v56 }
 0x2fe   : > { %v385_v58 = vpop.permute.xlu1 %384 }
 0x2ff   : > { %927 = vpow2.f32 %v378_v57  ;;  %853 = vmatpush3.bf16.msra.mxu0 %v385_v58 }
 0x300   : > { %864 = vmatprep.subr.bf16.mxu0 %v965_v0 }
 0x302   : > { %v505_v59 = vpop.xlane.xlu0 %504  ;;  %v643_v10 = vpop.permute.xlu1 %642 }
 0x303   : > { %v506_v60 = vsub.f32 %v502_v44, %v505_v59 }
 0x305   : > { %v507_v61 = vmul.f32 1.442695, %v506_v60 }
 0x307   : > { %929 = vpow2.f32 %v507_v61 }
 0x309   : > { %v928_v62 = vpop.eup %927 }
 0x30a   : > { %v634_v63 = vpop.xlane.xlu0 %633  ;;  %v380_v1 = vsel %vm250_vm3, %v928_v62, 0.0  ;;  %v383_v2 = vpack.c.bf16 %v928_v62, %v928_v62 }
 0x30b   : > { %v635_v3 = vsub.f32 %v631_v50, %v634_v63  ;;  %381 = vadd.xlane.f32.xlu1 %v380_v1 }
 0x30c   : > { %855 = vmatmul.mubr.msk.bf16.vlgmr.msra.gmra.mrb[4].mxu0 %vm250_vm3, %v383_v2 }
 0x30d   : > { %v636_v4 = vmul.f32 1.442695, %v635_v3  ;;  %866 = vmatprep.mubr.msk.bf16.mxu0 %vm966_vm0, %v965_v0 }
 0x30e   : > { %v514_v5 = vpop.permute.xlu0 %513 }
 0x30f   : > { %931 = vpow2.f32 %v636_v4  ;;  %258 = vadd.xlane.f32.xlu1 %v257_v6  ;;  %865 = vmatpush3.bf16.msra.mxu0 %v514_v5 }
 0x310   : > { %876 = vmatprep.subr.bf16.mxu0 %v965_v0 }
 0x311   : > { %v930_v7 = vpop.eup %929 }
 0x312   : > { %v509_v8 = vsel %vm250_vm3, %v930_v7, 0.0  ;;  %v512_v9 = vpack.c.bf16 %v930_v7, %v930_v7 }
 0x313   : > { %510 = vadd.xlane.f32.xlu0 %v509_v8 }
 0x314   : > { %867 = vmatmul.mubr.msk.bf16.vlgmr.msra.gmra.mrb[8].mxu0 %vm250_vm3, %v512_v9 }
 0x315   : > { %877 = vmatpush3.bf16.msra.mxu0 %v643_v10  ;;  %878 = vmatprep.mubr.msk.bf16.mxu0 %vm966_vm0, %v965_v0 }
 0x319   : > { %v932_v11 = vpop.eup %931 }
 0x31a   : > { %v638_v12 = vsel %vm250_vm3, %v932_v11, 0.0  ;;  %v641_v13 = vpack.c.bf16 %v932_v11, %v932_v11 }
 0x31b   : > { %639 = vadd.xlane.f32.xlu0 %v638_v12 }
 0x31c   : > { %879 = vmatmul.mubr.msk.bf16.vlgmr.msra.gmra.mrb[12].mxu0 %vm250_vm3, %v641_v13 }
 0x398   : > { %v382_v14 = vpop.xlane.xlu1 %381 }
 0x39c   : > { %v259_v15 = vpop.xlane.xlu1 %258 }
 0x39d   : > { %933 = vrcp.f32 %v259_v15 }
 0x39e   : > { %935 = vrcp.f32 %v382_v14 }
 0x3a0   : > { %v511_v18 = vpop.xlane.xlu0 %510 }
 0x3a1   : > { %937 = vrcp.f32 %v511_v18 }
 0x3a7   : > { %v934_v16 = vpop.eup %933 }
 0x3a8   : > { %v308_v17 = vmul.f32 %v934_v16, %v1064_v33  ;;  %v936_v19 = vpop.eup %935  ;;  %v640_v24 = vpop.xlane.xlu0 %639 }
 0x3a9   : > { %939 = vrcp.f32 %v640_v24 }
 0x3aa   : > { %v309_v0 = vpack.c.bf16 %v308_v17, %v308_v17 }
 0x3ab   : > { %v938_v27 = vpop.eup %937 }
 0x3ac   : > { %311 = vst.msk [vmem:[%s1095_s30] sm:$0xf] %vm310_vm4, %v309_v0 }
 0x3b3   : > { %v940_v34 = vpop.eup %939 }
 0x3df   : > { %v424_v20 = vpop.f32.mrb[4].mxu0 }
 0x3e0   : > { %v431_v21 = vmul.f32 %v936_v19, %v424_v20  ;;  %v856_v22 = vpop.f32.mrb[5].mxu0 }
 0x3e1   : > { %v427_v23 = vpop.f32.mrb[6].mxu0 }
 0x3e2   : > { %v815_v25 = vpack.c.bf16 %v431_v21, %v431_v21  ;;  %v857_v26 = vpop.f32.mrb[7].mxu0 }
 0x3e4   : > { %436 = vrot.lane.b32.xlu0 %v815_v25, %s974_s3 }
 0x3e7   : > { %v553_v28 = vpop.f32.mrb[8].mxu0 }
 0x3e8   : > { %v560_v29 = vmul.f32 %v938_v27, %v553_v28  ;;  %v868_v30 = vpop.f32.mrb[9].mxu0 }
 0x3e9   : > { %v556_v31 = vpop.f32.mrb[10].mxu0 }
 0x3ea   : > { %v816_v32 = vpack.c.bf16 %v560_v29, %v560_v29  ;;  %v869_v33 = vpop.f32.mrb[11].mxu0 }
 0x3ec   : > { %565 = vrot.lane.b32.xlu1 %v816_v32, %s975_s4 }
 0x3ef   : > { %v682_v35 = vpop.f32.mrb[12].mxu0 }
 0x3f0   : > { %v689_v36 = vmul.f32 %v940_v34, %v682_v35  ;;  %v880_v37 = vpop.f32.mrb[13].mxu0 }
 0x3f1   : > { %v685_v38 = vpop.f32.mrb[14].mxu0 }
 0x3f2   : > { %v817_v39 = vpack.c.bf16 %v689_v36, %v689_v36  ;;  %v881_v40 = vpop.f32.mrb[15].mxu0 }
 0x3f4   : > { %694 = vrot.lane.b32.xlu1 %v817_v39, %s976_s5 }
 0x456   : > { %v437_v41 = vpop.permute.xlu0 %436 }
 0x457   : > { %440 = vst.msk [vmem:[%s1095_s30] sm:$0xf] %vm439_vm5, %v437_v41 }
 0x45e   : > { %v566_v42 = vpop.permute.xlu1 %565 }
 0x45f   : > { %569 = vst.msk [vmem:[%s1095_s30] sm:$0xf] %vm568_vm6, %v566_v42 }
 0x466   : > { %v695_v43 = vpop.permute.xlu1 %694 }
 0x467   : > { %698 = vst.msk [vmem:[%s1095_s30] sm:$0xf] %vm697_vm7, %v695_v43 }
 0x468 PF: > { %s12_s11 = sadd.s32 1, %s963_s11   ;;  %s1113_s9 = smov %s959_s10 }
 0x469   : > { %p9_p5 = scmp.ge.s32.totalorder %s12_s11, 4   ;;  %s1114_s10 = smov %s1116_s12 }
 0x46b   :  { %11 = sbr.rel (!%p9_p5) target bundleno = 2 (0x2), region = 61 }

</bundles_post_ra>
